<compile_context>
chip_gen: v5e
topology: v5e:2x2
jax: 0.10.0
libtpu: 0.0.40
codegen_flags: <defaults>
</compile_context>

<pallas_src>
import jax
import jax.numpy as jnp
from jax import lax
from jax.experimental import pallas as pl
from jax.experimental.pallas import tpu as pltpu  # noqa: F401  (TPU backend)


# ----------------------------- config ---------------------------------------
D_EMBED = 32
D_MLP = 64
N_CTX = 8
SAMPLE_COUNT = 2
WEIGHT_ALPHA = 1.0
BATCH = 2


# ----------------------------- kernel ---------------------------------------
def mlp_group_kernel(x_ref, win_ref, bin_ref, wout_ref, bout_ref, out_ref):
    # x_ref:    (B, S, C, E)  full activations, resident in VMEM
    # win_ref:  (S, M, E)     per-sample W_in
    # bin_ref:  (1, M)        shared b_in
    # wout_ref: (S, E, M)     per-sample W_out
    # bout_ref: (1, E)        shared b_out
    # out_ref:  (B, S, C, E)
    B, S, C, E = x_ref.shape

    b_in = bin_ref[...]     # (1, M) -- loaded once
    b_out = bout_ref[...]   # (1, E)

    # S is a small static constant (2): unroll the per-sample loop at trace
    # time so each sample becomes one pair of (B*C, E) x (E, M) matmuls.
    for s in range(S):
        # (B, C, E) -> (B*C, E); C == 8 sublanes, so this merge is layout-free.
        x_s = x_ref[:, s, :, :].reshape(B * C, E)
        w_in = win_ref[s]    # (M, E)
        w_out = wout_ref[s]  # (E, M)

        # pre[r, m] = sum_e x[r, e] * W_in[m, e]  (contract last dims, no transpose)
        pre = lax.dot_general(x_s, w_in, (((1,), (1,)), ((), ())),
                              preferred_element_type=jnp.float32)
        post = jnp.maximum(pre + b_in, 0.0)           # ReLU, (B*C, M)

        # y[r, e] = sum_m post[r, m] * W_out[e, m]
        y = lax.dot_general(post, w_out, (((1,), (1,)), ((), ())),
                            preferred_element_type=jnp.float32)
        out_ref[:, s, :, :] = (y + b_out).reshape(B, C, E)


# ----------------------------- wrapper ---------------------------------------
def mlp_group_forward(x, w_in, b_in, w_out, b_out):
    """x: (B, S, C, E) float32.  Returns MLPGroup.forward(x): (B, S, C, E)."""
    B, S, C, E = x.shape
    M = w_in.shape[1]

    # Two matmuls of (B*S*C, E)x(E, M) and (B*S*C, M)x(M, E) worth of FLOPs.
    flops = 2 * (2 * B * S * C * E * M)
    bytes_accessed = 4 * (2 * B * S * C * E + 2 * S * M * E + M + E)
    cost = pl.CostEstimate(flops=flops, transcendentals=0,
                           bytes_accessed=bytes_accessed)

    # Single invocation, no grid: all operands are staged as full-array VMEM
    # blocks (total footprint ~50 KB << VMEM on v5e/v6e/v7x).
    return pl.pallas_call(
        mlp_group_kernel,
        out_shape=jax.ShapeDtypeStruct((B, S, C, E), jnp.float32),
        cost_estimate=cost,
    )(x, w_in, b_in.reshape(1, M), w_out, b_out.reshape(1, E))


# ----------------------------- pure-JAX reference -----------------------------
def reference_forward(x, w_in, b_in, w_out, b_out):
    pre = jnp.einsum("smd,bspd->bspm", w_in, x) + b_in
    post = jnp.maximum(pre, 0.0)
    return jnp.einsum("sdm,bspm->bspd", w_out, post) + b_out


# ----------------------------- main -------------------------------------------
if __name__ == "__main__":
    key = jax.random.PRNGKey(0)
    kx, k1, k2, k3, k4 = jax.random.split(key, 5)
    inv_se = 1.0 / jnp.sqrt(jnp.float32(D_EMBED))

    x = jax.random.normal(kx, (BATCH, SAMPLE_COUNT, N_CTX, D_EMBED), jnp.float32)
    W_in = (WEIGHT_ALPHA * jax.random.normal(
        k1, (SAMPLE_COUNT, D_MLP, D_EMBED), jnp.float32) * inv_se)
    W_out = (WEIGHT_ALPHA * jax.random.normal(
        k2, (SAMPLE_COUNT, D_EMBED, D_MLP), jnp.float32) * inv_se)
    # The module initializes biases to zero; use small random values here so
    # the bias/broadcast path of the kernel is actually exercised.
    b_in = 0.1 * jax.random.normal(k3, (D_MLP,), jnp.float32)
    b_out = 0.1 * jax.random.normal(k4, (D_EMBED,), jnp.float32)

    out = jax.block_until_ready(mlp_group_forward(x, W_in, b_in, W_out, b_out))
    ref = jax.block_until_ready(reference_forward(x, W_in, b_in, W_out, b_out))

    assert out.shape == (BATCH, SAMPLE_COUNT, N_CTX, D_EMBED), out.shape
    err = float(jnp.max(jnp.abs(out - ref)))
    assert jnp.allclose(out, ref, atol=1e-5, rtol=1e-5), err
    print("KERNEL_OK")
</pallas_src>

<mosaic_0001>
module attributes {stable_mosaic.version = 11 : i64} {
  func.func @mlp_group_kernel(%arg0: memref<2x2x8x32xf32, #tpu.memory_space<vmem>>, %arg1: memref<2x64x32xf32, #tpu.memory_space<vmem>>, %arg2: memref<1x64xf32, #tpu.memory_space<vmem>>, %arg3: memref<2x32x64xf32, #tpu.memory_space<vmem>>, %arg4: memref<1x32xf32, #tpu.memory_space<vmem>>, %arg5: memref<2x2x8x32xf32, #tpu.memory_space<vmem>>) attributes {dimension_semantics = [], scalar_prefetch = 0 : i64, scratch_operands = 0 : i64, tpu.core_type = #tpu.core_type<tc>} {
    %c0 = arith.constant 0 : index
    %c0_0 = arith.constant 0 : index
    %0 = vector.load %arg2[%c0, %c0_0] : memref<1x64xf32, #tpu.memory_space<vmem>>, vector<1x64xf32>
    %c0_1 = arith.constant 0 : index
    %c0_2 = arith.constant 0 : index
    %1 = vector.load %arg4[%c0_1, %c0_2] : memref<1x32xf32, #tpu.memory_space<vmem>>, vector<1x32xf32>
    %c0_3 = arith.constant 0 : index
    %c0_4 = arith.constant 0 : index
    %c0_5 = arith.constant 0 : index
    %c0_6 = arith.constant 0 : index
    %2 = vector.load %arg0[%c0_3, %c0_4, %c0_5, %c0_6] : memref<2x2x8x32xf32, #tpu.memory_space<vmem>>, vector<2x1x8x32xf32>
    %3 = vector.shape_cast %2 : vector<2x1x8x32xf32> to vector<2x8x32xf32>
    %4 = vector.shape_cast %3 : vector<2x8x32xf32> to vector<16x32xf32>
    %c0_7 = arith.constant 0 : index
    %c0_8 = arith.constant 0 : index
    %c0_9 = arith.constant 0 : index
    %5 = vector.load %arg1[%c0_7, %c0_8, %c0_9] : memref<2x64x32xf32, #tpu.memory_space<vmem>>, vector<1x64x32xf32>
    %6 = vector.shape_cast %5 : vector<1x64x32xf32> to vector<64x32xf32>
    %c0_10 = arith.constant 0 : index
    %c0_11 = arith.constant 0 : index
    %c0_12 = arith.constant 0 : index
    %7 = vector.load %arg3[%c0_10, %c0_11, %c0_12] : memref<2x32x64xf32, #tpu.memory_space<vmem>>, vector<1x32x64xf32>
    %8 = vector.shape_cast %7 : vector<1x32x64xf32> to vector<32x64xf32>
    %cst = arith.constant dense<0.000000e+00> : vector<16x64xf32>
    %9 = tpu.matmul %4, %6, %cst {dimension_numbers = #tpu.dot_dimension_numbers<[1], [1], [0], [0], [0, 0, 1, 0], [], []>} : vector<16x32xf32>, vector<64x32xf32>, vector<16x64xf32> -> vector<16x64xf32>
    %10 = vector.broadcast %0 : vector<1x64xf32> to vector<16x64xf32>
    %11 = arith.addf %9, %10 : vector<16x64xf32>
    %cst_13 = arith.constant 0.000000e+00 : f32
    %12 = vector.broadcast %cst_13 : f32 to vector<16x64xf32>
    %13 = arith.maximumf %11, %12 : vector<16x64xf32>
    %cst_14 = arith.constant dense<0.000000e+00> : vector<16x32xf32>
    %14 = tpu.matmul %13, %8, %cst_14 {dimension_numbers = #tpu.dot_dimension_numbers<[1], [1], [0], [0], [0, 0, 1, 0], [], []>} : vector<16x64xf32>, vector<32x64xf32>, vector<16x32xf32> -> vector<16x32xf32>
    %15 = vector.broadcast %1 : vector<1x32xf32> to vector<16x32xf32>
    %16 = arith.addf %14, %15 : vector<16x32xf32>
    %17 = vector.shape_cast %16 : vector<16x32xf32> to vector<2x8x32xf32>
    %c0_15 = arith.constant 0 : index
    %c0_16 = arith.constant 0 : index
    %c0_17 = arith.constant 0 : index
    %c0_18 = arith.constant 0 : index
    %18 = vector.load %arg5[%c0_15, %c0_16, %c0_17, %c0_18] : memref<2x2x8x32xf32, #tpu.memory_space<vmem>>, vector<2x1x8x32xf32>
    %19 = vector.shape_cast %18 : vector<2x1x8x32xf32> to vector<2x8x32xf32>
    %20 = vector.shape_cast %17 : vector<2x8x32xf32> to vector<2x1x8x32xf32>
    tpu.vector_store %arg5[%c0_15, %c0_16, %c0_17, %c0_18], %20 {strides = array<i32>} : memref<2x2x8x32xf32, #tpu.memory_space<vmem>>, vector<2x1x8x32xf32>,
    %c0_19 = arith.constant 0 : index
    %c1 = arith.constant 1 : index
    %c0_20 = arith.constant 0 : index
    %c0_21 = arith.constant 0 : index
    %21 = vector.load %arg0[%c0_19, %c1, %c0_20, %c0_21] : memref<2x2x8x32xf32, #tpu.memory_space<vmem>>, vector<2x1x8x32xf32>
    %22 = vector.shape_cast %21 : vector<2x1x8x32xf32> to vector<2x8x32xf32>
    %23 = vector.shape_cast %22 : vector<2x8x32xf32> to vector<16x32xf32>
    %c1_22 = arith.constant 1 : index
    %c0_23 = arith.constant 0 : index
    %c0_24 = arith.constant 0 : index
    %24 = vector.load %arg1[%c1_22, %c0_23, %c0_24] : memref<2x64x32xf32, #tpu.memory_space<vmem>>, vector<1x64x32xf32>
    %25 = vector.shape_cast %24 : vector<1x64x32xf32> to vector<64x32xf32>
    %c1_25 = arith.constant 1 : index
    %c0_26 = arith.constant 0 : index
    %c0_27 = arith.constant 0 : index
    %26 = vector.load %arg3[%c1_25, %c0_26, %c0_27] : memref<2x32x64xf32, #tpu.memory_space<vmem>>, vector<1x32x64xf32>
    %27 = vector.shape_cast %26 : vector<1x32x64xf32> to vector<32x64xf32>
    %cst_28 = arith.constant dense<0.000000e+00> : vector<16x64xf32>
    %28 = tpu.matmul %23, %25, %cst_28 {dimension_numbers = #tpu.dot_dimension_numbers<[1], [1], [0], [0], [0, 0, 1, 0], [], []>} : vector<16x32xf32>, vector<64x32xf32>, vector<16x64xf32> -> vector<16x64xf32>
    %29 = vector.broadcast %0 : vector<1x64xf32> to vector<16x64xf32>
    %30 = arith.addf %28, %29 : vector<16x64xf32>
    %cst_29 = arith.constant 0.000000e+00 : f32
    %31 = vector.broadcast %cst_29 : f32 to vector<16x64xf32>
    %32 = arith.maximumf %30, %31 : vector<16x64xf32>
    %cst_30 = arith.constant dense<0.000000e+00> : vector<16x32xf32>
    %33 = tpu.matmul %32, %27, %cst_30 {dimension_numbers = #tpu.dot_dimension_numbers<[1], [1], [0], [0], [0, 0, 1, 0], [], []>} : vector<16x64xf32>, vector<32x64xf32>, vector<16x32xf32> -> vector<16x32xf32>
    %34 = vector.broadcast %1 : vector<1x32xf32> to vector<16x32xf32>
    %35 = arith.addf %33, %34 : vector<16x32xf32>
    %36 = vector.shape_cast %35 : vector<16x32xf32> to vector<2x8x32xf32>
    %c0_31 = arith.constant 0 : index
    %c1_32 = arith.constant 1 : index
    %c0_33 = arith.constant 0 : index
    %c0_34 = arith.constant 0 : index
    %37 = vector.load %arg5[%c0_31, %c1_32, %c0_33, %c0_34] : memref<2x2x8x32xf32, #tpu.memory_space<vmem>>, vector<2x1x8x32xf32>
    %38 = vector.shape_cast %37 : vector<2x1x8x32xf32> to vector<2x8x32xf32>
    %39 = vector.shape_cast %36 : vector<2x8x32xf32> to vector<2x1x8x32xf32>
    tpu.vector_store %arg5[%c0_31, %c1_32, %c0_33, %c0_34], %39 {strides = array<i32>} : memref<2x2x8x32xf32, #tpu.memory_space<vmem>>, vector<2x1x8x32xf32>,
    return
  }
}

</mosaic_0001>

<bundles_post_ra>
// kernel: tpu_custom_call.1
= control target key start
LH: loop header
LB: loop body
LE: loop exit
PB: predicated region body
PF: predicated region fallthrough
CT: control target
= control target key end

     0   :  { %vm40_vm0 = vcmask 261120   ;;  %s516_s0 = inlined_call_operand.vmem [shape: f32[2,2,8,32], index: 0, kind: input, shape index: {}]   ;;  %s517_s1 = inlined_call_operand.vmem [shape: f32[2,64,32], index: 1, kind: input, shape index: {}]   ;;  %s518_s2 = inlined_call_operand.vmem [shape: f32[1,64], index: 2, kind: input, shape index: {}]   ;;  %s519_s3 = inlined_call_operand.vmem [shape: f32[2,32,64], index: 3, kind: input, shape index: {}]   ;;  %s520_s4 = inlined_call_operand.vmem [shape: f32[1,32], index: 4, kind: input, shape index: {}]   ;;  %s521_s5 = inlined_call_operand.hbm [shape: f32[2,2,8,32], index: 5, kind: output, shape index: {}]  }
   0x1   :  { %v302_v0 = vld [vmem:[%s517_s1 + $0x78] sm:$0xff]  ;;  %v301_v2 = vld [vmem:[%s517_s1 + $0x70] sm:$0xff]  ;;  %v300_v4 = vld [vmem:[%s517_s1 + $0x68] sm:$0xff] }
   0x2   :  { %307 = vmatpush.xpose.msk.msra.mxu2 %vm40_vm0, %v302_v0  ;;  %v32_v1 = vld [vmem:[%s517_s1 + $0x38] sm:$0xff]  ;;  %v31_v3 = vld [vmem:[%s517_s1 + $0x30] sm:$0xff] }
   0x3   :  { %277 = vmatpush.xpose.msk.msra.mxu0 %vm40_vm0, %v32_v1 }
   0x6   :  { %308 = vmatpush.xpose.msk.msra.mxu2 %vm40_vm0, %v301_v2 }
   0x7   :  { %278 = vmatpush.xpose.msk.msra.mxu0 %vm40_vm0, %v31_v3 }
   0x8   :  { %10 = vsyncpa [#allocation3], 0  ;;  %v30_v5 = vld [vmem:[%s517_s1 + $0x28] sm:$0xff]  ;;  %vm99_vm1 = vcmask 523264   ;;  %v306_v6 = vld [vmem:[%s519_s3 + $0x38] sm:$0xff]  ;;  %s354_s24 = smov [#allocation2]  }
   0x9   :  { %v36_v7 = vld [vmem:[%s519_s3 + $0x18] sm:$0xff]  ;;  %v299_v8 = vld [vmem:[%s517_s1 + $0x60] sm:$0xff]  ;;  %317 = vmatpush.xpose.msk.msra.mxu3 %vm99_vm1, %v306_v6  ;;  %v305_v10 = vld [vmem:[%s519_s3 + $0x30] sm:$0xff]  ;;  %s263_s25 = sshll.u32 %s354_s24, 4  ;;  %s265_s28 = sshll.u32 %s521_s5, 4  ;;  %s264_s25 = int_to_ptr.vmem [resolvable:$true] %s263_s25  ;;  %s266_s28 = int_to_ptr.hbm [resolvable:$true] %s265_s28 }
   0xa   :  { %309 = vmatpush.xpose.msk.msra.mxu2 %vm40_vm0, %v300_v4  ;;  %v29_v9 = vld [vmem:[%s517_s1 + $0x20] sm:$0xff]  ;;  %287 = vmatpush.xpose.msk.msra.mxu1 %vm99_vm1, %v36_v7  ;;  %v35_v11 = vld [vmem:[%s519_s3 + $0x10] sm:$0xff]  ;;  %v298_v12 = vld [vmem:[%s517_s1 + $0x58] sm:$0xff]  ;;  %s356_s29 = smov 8  }
   0xb   :  { %279 = vmatpush.xpose.msk.msra.mxu0 %vm40_vm0, %v30_v5  ;;  %v28_v13 = vld [vmem:[%s517_s1 + $0x18] sm:$0xff]  ;;  %v304_v14 = vld [vmem:[%s519_s3 + $0x28] sm:$0xff]  ;;  %v297_v15 = vld [vmem:[%s517_s1 + $0x50] sm:$0xff] }
   0xc   :  { %v27_v16 = vld [vmem:[%s517_s1 + $0x10] sm:$0xff]  ;;  %v296_v17 = vld [vmem:[%s517_s1 + $0x48] sm:$0xff]  ;;  %v295_v19 = vld [vmem:[%s517_s1 + $0x40] sm:$0xff] }
   0xd   :  { %318 = vmatpush.xpose.msk.msra.mxu3 %vm99_vm1, %v305_v10  ;;  %v26_v18 = vld [vmem:[%s517_s1 + $0x8] sm:$0xff]  ;;  %v25_v20 = vld [vmem:[%s517_s1] sm:$0xff]  ;;  %v294_v23 = vld [vmem:[%s516_s0 + $0x18] sm:$0xff] }
   0xe   :  { %310 = vmatpush.xpose.msk.msra.mxu2 %vm40_vm0, %v299_v8  ;;  %288 = vmatpush.xpose.msk.msra.mxu1 %vm99_vm1, %v35_v11  ;;  %v293_v21 = vld [vmem:[%s516_s0 + $0x8] sm:$0xff]  ;;  %v23_v22 = vld [vmem:[%s516_s0] sm:$0xff]  ;;  %v24_v24 = vld [vmem:[%s516_s0 + $0x10] sm:$0xff] }
   0xf   :  { %280 = vmatpush.xpose.msk.msra.mxu0 %vm40_vm0, %v29_v9  ;;  %v303_v25 = vld [vmem:[%s519_s3 + $0x20] sm:$0xff]  ;;  %v34_v26 = vld [vmem:[%s519_s3 + $0x8] sm:$0xff] }
  0x10   :  { %v33_v27 = vld [vmem:[%s519_s3] sm:$0xff] }
  0x11   :  { %319 = vmatpush.xpose.msk.msra.mxu3 %vm99_vm1, %v304_v14  ;;  %v326_v28 = vld [vmem:[%s518_s2] ss:$0 sm:$0xff] }
  0x12   :  { %311 = vmatpush.xpose.msk.msra.mxu2 %vm40_vm0, %v298_v12  ;;  %289 = vmatpush.xpose.msk.msra.mxu1 %vm99_vm1, %v34_v26  ;;  %v327_v41 = vld [vmem:[%s520_s4] ss:$0 sm:$0xff]  ;;  %s355_s4 = smov 128  }
  0x13   :  { %281 = vmatpush.xpose.msk.msra.mxu0 %vm40_vm0, %v28_v13 }
  0x15   :  { %320 = vmatpush.xpose.msk.msra.mxu3 %vm99_vm1, %v303_v25 }
  0x16   :  { %312 = vmatpush.xpose.msk.msra.mxu2 %vm40_vm0, %v297_v15  ;;  %290 = vmatpush.xpose.msk.msra.mxu1 %vm99_vm1, %v33_v27 }
  0x17   :  { %282 = vmatpush.xpose.msk.msra.mxu0 %vm40_vm0, %v27_v16 }
  0x1a   :  { %313 = vmatpush.xpose.msk.msra.mxu2 %vm40_vm0, %v296_v17 }
  0x1b   :  { %283 = vmatpush.xpose.msk.msra.mxu0 %vm40_vm0, %v26_v18 }
  0x1e   :  { %314 = vmatpush.xpose.msk.msra.mxu2 %vm40_vm0, %v295_v19 }
  0x1f   :  { %284 = vmatpush.xpose.msk.msra.mxu0 %vm40_vm0, %v25_v20 }
  0x21   :  { %315 = vmatmul.msk.f32.vlgmr.msra.gmra.mxu2 %vm40_vm0, %v293_v21 }
  0x22   :  { %285 = vmatmul.msk.f32.vlgmr.msra.gmra.mxu0 %vm40_vm0, %v23_v22 }
  0x29   :  { %316 = vmatmul.msk.f32.gmra.mxu2 %vm40_vm0, %v294_v23 }
  0x2a   :  { %286 = vmatmul.msk.f32.gmra.mxu0 %vm40_vm0, %v24_v24 }
  0x9f   :  { %v88_v29 = vpop.f32.mrf.mxu0 }
  0xa0   :  { %v89_v30 = vadd.f32 %v326_v28, %v88_v29 }
  0xa2   :  { %v94_v31 = vmax.f32 %v89_v30, 0.0 }
  0xa4   :  { %v207_v32 = vpop.f32.mrf.mxu2  ;;  %291 = vmatmul.msk.f32.vlgmr.msra.gmra.mxu1 %vm99_vm1, %v94_v31 }
  0xa5   :  { %v208_v33 = vadd.f32 %v326_v28, %v207_v32 }
  0xa7   :  { %v213_v34 = vmax.f32 %v208_v33, 0.0  ;;  %v91_v35 = vpop.f32.mrf.mxu0 }
  0xa8   :  { %v92_v36 = vadd.f32 %v326_v28, %v91_v35 }
  0xa9   :  { %321 = vmatmul.msk.f32.vlgmr.msra.gmra.mxu3 %vm99_vm1, %v213_v34 }
  0xaa   :  { %v95_v37 = vmax.f32 %v92_v36, 0.0 }
  0xac   :  { %v210_v38 = vpop.f32.mrf.mxu2  ;;  %292 = vmatmul.msk.f32.gmra.mxu1 %vm99_vm1, %v95_v37 }
  0xad   :  { %v211_v39 = vadd.f32 %v326_v28, %v210_v38 }
  0xaf   :  { %v214_v40 = vmax.f32 %v211_v39, 0.0 }
  0xb1   :  { %322 = vmatmul.msk.f32.gmra.mxu3 %vm99_vm1, %v214_v40 }
 0x121   :  { %v135_v42 = vpop.f32.mrf.mxu1 }
 0x122   :  { %v136_v43 = vadd.f32 %v327_v41, %v135_v42 }
 0x124   :  { %141 = vst.msk [vmem:[#allocation2] sm:$0xff] %vm40_vm0, %v136_v43 }
 0x129   :  { %v138_v44 = vpop.f32.mrf.mxu1 }
 0x12a   :  { %v139_v45 = vadd.f32 %v327_v41, %v138_v44 }
 0x12c   :  { %v250_v46 = vpop.f32.mrf.mxu3  ;;  %142 = vst.msk [vmem:[#allocation2 + $0x10] sm:$0xff] %vm40_vm0, %v139_v45 }
 0x12d   :  { %v251_v47 = vadd.f32 %v327_v41, %v250_v46 }
 0x12f   :  { %257 = vst.msk [vmem:[#allocation2 + $0x8] sm:$0xff] %vm40_vm0, %v251_v47 }
 0x134   :  { %v253_v48 = vpop.f32.mrf.mxu3 }
 0x135   :  { %v254_v49 = vadd.f32 %v327_v41, %v253_v48 }
 0x137   :  { %258 = vst.msk [vmem:[#allocation2 + $0x18] sm:$0xff] %vm40_vm0, %v254_v49 }
 0x138   :  { %271 = dma.vmem_to_hbm [thread:$0]  %s264_s25, 512, %s266_s28, [#allocation3], %s355_s4, %s355_s4, %s356_s29  }
 0x139   :  { %352 = dma.done.wait [#allocation3], 512  }
 0x13a   :  { %353 = vsyncadd [#allocation3], 4294966784 }
 0x13b   :  { %276 = vsyncpa [#allocation3], 1 }

</bundles_post_ra>
